<compile_context>
chip_gen: v7x
topology: tpu7x:2x2x1
jax: 0.10.0
libtpu: 0.0.40
codegen_flags: <defaults>
</compile_context>

<pallas_src>
import jax
import jax.numpy as jnp
from jax.experimental import pallas as pl
from jax.experimental.pallas import tpu as pltpu

LN_EPS = 1e-5


def _layer_norm(x, gamma, beta):
    # x: (S, D), gamma/beta: (1, D)   (biased variance + eps, as in PyTorch)
    mean = jnp.mean(x, axis=-1, keepdims=True)
    xc = x - mean
    var = jnp.mean(xc * xc, axis=-1, keepdims=True)
    inv = jax.lax.rsqrt(var + LN_EPS)
    return xc * inv * gamma + beta


def _encoder_layer_kernel(
    src_ref, pos_ref,
    wqk_ref, bqk_ref, wv_ref, bv_ref,       # per-head, pre-transposed, q-scale folded
    wo_ref, bo_ref,                          # per-head rows of W_o^T, full bias
    g1_ref, ln_b1_ref,
    w1_ref, fb1_ref, w2_ref, fb2_ref,        # FFN, pre-transposed
    g2_ref, ln_b2_ref,
    out_ref,
    acc_ref,                                 # (S, D) f32 attention-output accumulator
):
    h = pl.program_id(1)
    last_h = pl.num_programs(1) - 1

    @pl.when(h == 0)
    def _():
        acc_ref[...] = jnp.zeros_like(acc_ref)

    src = src_ref[0].astype(jnp.float32)     # (S, D)
    pos = pos_ref[0].astype(jnp.float32)     # (S, D)
    Dh = wv_ref.shape[-1]
    mm_dtype = wqk_ref.dtype                 # f32 or bf16 (set by wrapper)

    # q = k = with_pos_embed(src, pos); fused Q/K projection for this head.
    qk_in = (src + pos).astype(mm_dtype)
    qk = jnp.dot(qk_in, wqk_ref[0], preferred_element_type=jnp.float32) + bqk_ref[0]
    q = qk[:, :Dh]                           # 1/sqrt(Dh) already folded into weights
    k = qk[:, Dh:]
    v = jnp.dot(src.astype(mm_dtype), wv_ref[0],
                preferred_element_type=jnp.float32) + bv_ref[0]

    # scaled dot-product attention for this head (no masks, eval -> no dropout)
    s = jnp.einsum('sd,td->st', q.astype(mm_dtype), k.astype(mm_dtype),
                   preferred_element_type=jnp.float32)          # (S, S)
    s = s - jnp.max(s, axis=-1, keepdims=True)
    p = jnp.exp(s)
    denom = jnp.sum(p, axis=-1, keepdims=True)
    p = p * pl.reciprocal(denom, approx=True)                   # EUP slot
    o_h = jnp.dot(p.astype(mm_dtype), v.astype(mm_dtype),
                  preferred_element_type=jnp.float32)           # (S, Dh)

    # accumulate this head's slice of the MHA output projection
    acc_ref[...] += jnp.dot(o_h.astype(mm_dtype), wo_ref[0],
                            preferred_element_type=jnp.float32)  # (S, D)

    @pl.when(h == last_h)
    def _():
        attn_out = acc_ref[...] + bo_ref[...]

        # residual + LayerNorm 1
        x = _layer_norm(src + attn_out, g1_ref[...], ln_b1_ref[...])

        # FFN: linear1 -> relu -> linear2
        h1 = jnp.dot(x.astype(mm_dtype), w1_ref[...],
                     preferred_element_type=jnp.float32) + fb1_ref[...]
        h1 = jnp.maximum(h1, 0.0)
        ffn = jnp.dot(h1.astype(mm_dtype), w2_ref[...],
                      preferred_element_type=jnp.float32) + fb2_ref[...]

        # residual + LayerNorm 2
        y = _layer_norm(x + ffn, g2_ref[...], ln_b2_ref[...])
        out_ref[0] = y.astype(out_ref.dtype)


def transformer_encoder_layer(src, pos, params, *, nhead, matmul_dtype=jnp.float32):
    """src, pos: (S, B, D) float32 — PyTorch (seq, batch, d_model) convention."""
    S, B, D = src.shape
    F = params["w1"].shape[0]
    assert D % nhead == 0
    Dh = D // nhead
    scale = 1.0 / float(Dh) ** 0.5

    # ---- wrapper-side weight prep: transpose once, fold scale, slice heads ----
    wqkv = params["in_proj_w"]                   # (3D, D) rows = output features
    bqkv = params["in_proj_b"]                   # (3D,)
    wq_t = wqkv[:D].T * scale                    # (D, D)  (in, out), q-scale folded
    wk_t = wqkv[D:2 * D].T
    wv_t = wqkv[2 * D:].T
    bq = bqkv[:D] * scale
    bk = bqkv[D:2 * D]
    bv = bqkv[2 * D:]

    def per_head_cols(w):                        # (D, D) -> (H, D, Dh)
        return jnp.transpose(w.reshape(D, nhead, Dh), (1, 0, 2))

    wqk_h = jnp.concatenate([per_head_cols(wq_t), per_head_cols(wk_t)], axis=-1)  # (H,D,2Dh)
    wv_h = per_head_cols(wv_t)                                                    # (H,D,Dh)
    bqk_h = jnp.concatenate([bq.reshape(nhead, 1, Dh), bk.reshape(nhead, 1, Dh)], axis=-1)
    bv_h = bv.reshape(nhead, 1, Dh)

    wo_h = params["out_proj_w"].T.reshape(nhead, Dh, D)   # rows of W_o^T per head
    bo = params["out_proj_b"].reshape(1, D)

    w1_t = params["w1"].T                        # (D, F)
    fb1 = params["b1"].reshape(1, F)
    w2_t = params["w2"].T                        # (F, D)
    fb2 = params["b2"].reshape(1, D)

    g1 = params["ln1_g"].reshape(1, D)
    ln_b1 = params["ln1_b"].reshape(1, D)
    g2 = params["ln2_g"].reshape(1, D)
    ln_b2 = params["ln2_b"].reshape(1, D)

    # cast only the matmul weights (biases / LN params stay f32)
    cast = lambda w: w.astype(matmul_dtype)
    wqk_h, wv_h, wo_h, w1_t, w2_t = map(cast, (wqk_h, wv_h, wo_h, w1_t, w2_t))

    # (S, B, D) -> (B, S, D): one batch element per "parallel" grid step
    src_b = jnp.transpose(src, (1, 0, 2))
    pos_b = jnp.transpose(pos, (1, 0, 2))

    batch_spec = pl.BlockSpec((1, S, D), lambda b, h: (b, 0, 0))
    head_spec = lambda shape: pl.BlockSpec((1,) + shape[1:], lambda b, h: (h, 0, 0))
    const_spec = lambda shape: pl.BlockSpec(shape, lambda b, h: tuple(0 for _ in shape))

    in_specs = [
        batch_spec, batch_spec,
        head_spec(wqk_h.shape), head_spec(bqk_h.shape),
        head_spec(wv_h.shape), head_spec(bv_h.shape),
        head_spec(wo_h.shape),
        const_spec(bo.shape),
        const_spec(g1.shape), const_spec(ln_b1.shape),
        const_spec(w1_t.shape), const_spec(fb1.shape),
        const_spec(w2_t.shape), const_spec(fb2.shape),
        const_spec(g2.shape), const_spec(ln_b2.shape),
    ]

    out = pl.pallas_call(
        _encoder_layer_kernel,
        out_shape=jax.ShapeDtypeStruct((B, S, D), src.dtype),
        grid=(B, nhead),
        in_specs=in_specs,
        out_specs=batch_spec,
        scratch_shapes=[pltpu.VMEM((S, D), jnp.float32)],
        compiler_params=pltpu.CompilerParams(
            dimension_semantics=("parallel", "arbitrary"),
            vmem_limit_bytes=32 * 1024 * 1024,
        ),
    )(src_b, pos_b, wqk_h, bqk_h, wv_h, bv_h, wo_h, bo,
      g1, ln_b1, w1_t, fb1, w2_t, fb2, g2, ln_b2)

    return jnp.transpose(out, (1, 0, 2))


def _reference(src, pos, params, *, nhead):
    """Pure-JAX reference mirroring PyTorch forward_post (eval mode)."""
    S, B, D = src.shape
    Dh = D // nhead
    scale = 1.0 / (Dh ** 0.5)

    def ln(x, g, b):
        m = jnp.mean(x, -1, keepdims=True)
        v = jnp.mean((x - m) ** 2, -1, keepdims=True)
        return (x - m) / jnp.sqrt(v + LN_EPS) * g + b

    qk_in = src + pos
    wqkv, bqkv = params["in_proj_w"], params["in_proj_b"]
    q = qk_in @ wqkv[:D].T + bqkv[:D]
    k = qk_in @ wqkv[D:2 * D].T + bqkv[D:2 * D]
    v = src @ wqkv[2 * D:].T + bqkv[2 * D:]

    def split_heads(x):  # (S, B, D) -> (B, H, S, Dh)
        return jnp.transpose(x.reshape(S, B, nhead, Dh), (1, 2, 0, 3))

    qh, kh, vh = split_heads(q) * scale, split_heads(k), split_heads(v)
    p = jax.nn.softmax(jnp.einsum("bhsd,bhtd->bhst", qh, kh), axis=-1)
    a = jnp.einsum("bhst,bhtd->bhsd", p, vh)
    a = jnp.transpose(a, (2, 0, 1, 3)).reshape(S, B, D)
    attn_out = a @ params["out_proj_w"].T + params["out_proj_b"]

    x = ln(src + attn_out, params["ln1_g"], params["ln1_b"])
    h = jnp.maximum(x @ params["w1"].T + params["b1"], 0.0)
    ffn = h @ params["w2"].T + params["b2"]
    return ln(x + ffn, params["ln2_g"], params["ln2_b"])


if __name__ == "__main__":
    # Small shapes consistent with the module: seq=8, batch=2, d_model=32,
    # nhead=4, dim_feedforward=64.
    S, B, D, H, F = 8, 2, 32, 4, 64

    keys = jax.random.split(jax.random.PRNGKey(0), 10)
    params = {
        "in_proj_w": 0.1 * jax.random.normal(keys[0], (3 * D, D), jnp.float32),
        "in_proj_b": 0.1 * jax.random.normal(keys[1], (3 * D,), jnp.float32),
        "out_proj_w": 0.1 * jax.random.normal(keys[2], (D, D), jnp.float32),
        "out_proj_b": 0.1 * jax.random.normal(keys[3], (D,), jnp.float32),
        "ln1_g": jnp.ones((D,), jnp.float32),
        "ln1_b": jnp.zeros((D,), jnp.float32),
        "w1": 0.1 * jax.random.normal(keys[4], (F, D), jnp.float32),
        "b1": 0.1 * jax.random.normal(keys[5], (F,), jnp.float32),
        "w2": 0.1 * jax.random.normal(keys[6], (D, F), jnp.float32),
        "b2": 0.1 * jax.random.normal(keys[7], (D,), jnp.float32),
        "ln2_g": jnp.ones((D,), jnp.float32),
        "ln2_b": jnp.zeros((D,), jnp.float32),
    }

    src = jax.random.normal(keys[8], (S, B, D), jnp.float32)
    pos = jax.random.normal(keys[9], (S, B, D), jnp.float32)

    ref = _reference(src, pos, params, nhead=H)

    # f32 matmul path (tolerance covers the approx softmax reciprocal).
    out_f32 = jax.block_until_ready(
        transformer_encoder_layer(src, pos, params, nhead=H))
    assert out_f32.shape == (S, B, D)
    assert jnp.allclose(out_f32, ref, atol=5e-3, rtol=5e-3), "f32 kernel mismatch"

    # bf16 MXU path (weights + matmul operands in bf16, f32 accumulation).
    out_bf16 = jax.block_until_ready(
        transformer_encoder_layer(src, pos, params, nhead=H,
                                  matmul_dtype=jnp.bfloat16))
    assert jnp.allclose(out_bf16, ref, atol=1e-1, rtol=1e-1), "bf16 kernel mismatch"

    print("KERNEL_OK")
</pallas_src>

<mosaic_0001>
module attributes {stable_mosaic.version = 11 : i64} {
  func.func @_encoder_layer_kernel(%arg0: i32, %arg1: i32, %arg2: memref<1x8x32xf32, #tpu.memory_space<vmem>>, %arg3: memref<1x8x32xf32, #tpu.memory_space<vmem>>, %arg4: memref<1x32x16xf32, #tpu.memory_space<vmem>>, %arg5: memref<1x1x16xf32, #tpu.memory_space<vmem>>, %arg6: memref<1x32x8xf32, #tpu.memory_space<vmem>>, %arg7: memref<1x1x8xf32, #tpu.memory_space<vmem>>, %arg8: memref<1x8x32xf32, #tpu.memory_space<vmem>>, %arg9: memref<1x32xf32, #tpu.memory_space<vmem>>, %arg10: memref<1x32xf32, #tpu.memory_space<vmem>>, %arg11: memref<1x32xf32, #tpu.memory_space<vmem>>, %arg12: memref<32x64xf32, #tpu.memory_space<vmem>>, %arg13: memref<1x64xf32, #tpu.memory_space<vmem>>, %arg14: memref<64x32xf32, #tpu.memory_space<vmem>>, %arg15: memref<1x32xf32, #tpu.memory_space<vmem>>, %arg16: memref<1x32xf32, #tpu.memory_space<vmem>>, %arg17: memref<1x32xf32, #tpu.memory_space<vmem>>, %arg18: memref<1x8x32xf32, #tpu.memory_space<vmem>>, %arg19: memref<8x32xf32, #tpu.memory_space<vmem>>) attributes {dimension_semantics = [#tpu.dimension_semantics<parallel>, #tpu.dimension_semantics<arbitrary>], iteration_bounds = array<i64: 2, 4>, scalar_prefetch = 0 : i64, scratch_operands = 1 : i64, tpu.core_type = #tpu.core_type<tc>, window_params = [{transform_indices = @transform_0, window_bounds = array<i64: 1, 8, 32>}, {transform_indices = @transform_1, window_bounds = array<i64: 1, 8, 32>}, {transform_indices = @transform_2, window_bounds = array<i64: 1, 32, 16>}, {transform_indices = @transform_3, window_bounds = array<i64: 1, 1, 16>}, {transform_indices = @transform_4, window_bounds = array<i64: 1, 32, 8>}, {transform_indices = @transform_5, window_bounds = array<i64: 1, 1, 8>}, {transform_indices = @transform_6, window_bounds = array<i64: 1, 8, 32>}, {pipeline_mode = #tpu.pipeline_mode<synchronous>, transform_indices = @transform_7, window_bounds = array<i64: 1, 32>}, {pipeline_mode = #tpu.pipeline_mode<synchronous>, transform_indices = @transform_8, window_bounds = array<i64: 1, 32>}, {pipeline_mode = #tpu.pipeline_mode<synchronous>, transform_indices = @transform_9, window_bounds = array<i64: 1, 32>}, {pipeline_mode = #tpu.pipeline_mode<synchronous>, transform_indices = @transform_10, window_bounds = array<i64: 32, 64>}, {pipeline_mode = #tpu.pipeline_mode<synchronous>, transform_indices = @transform_11, window_bounds = array<i64: 1, 64>}, {pipeline_mode = #tpu.pipeline_mode<synchronous>, transform_indices = @transform_12, window_bounds = array<i64: 64, 32>}, {pipeline_mode = #tpu.pipeline_mode<synchronous>, transform_indices = @transform_13, window_bounds = array<i64: 1, 32>}, {pipeline_mode = #tpu.pipeline_mode<synchronous>, transform_indices = @transform_14, window_bounds = array<i64: 1, 32>}, {pipeline_mode = #tpu.pipeline_mode<synchronous>, transform_indices = @transform_15, window_bounds = array<i64: 1, 32>}, {transform_indices = @transform_16, window_bounds = array<i64: 1, 8, 32>}]} {
    %c0_i32 = arith.constant 0 : i32
    %0 = arith.cmpi eq, %arg1, %c0_i32 : i32
    %1 = arith.extui %0 : i1 to i32
    %c0_i32_0 = arith.constant 0 : i32
    %2 = arith.cmpi ne, %1, %c0_i32_0 : i32
    scf.if %2 {
      %cst_32 = arith.constant 0.000000e+00 : f32
      %45 = vector.broadcast %cst_32 : f32 to vector<8x32xf32>
      %c0_33 = arith.constant 0 : index
      %c0_34 = arith.constant 0 : index
      %46 = vector.load %arg19[%c0_33, %c0_34] : memref<8x32xf32, #tpu.memory_space<vmem>>, vector<8x32xf32>
      tpu.vector_store %arg19[%c0_33, %c0_34], %45 {strides = array<i32>} : memref<8x32xf32, #tpu.memory_space<vmem>>, vector<8x32xf32>,
    } else {
    }
    %c0 = arith.constant 0 : index
    %c0_1 = arith.constant 0 : index
    %c0_2 = arith.constant 0 : index
    %3 = vector.load %arg2[%c0, %c0_1, %c0_2] : memref<1x8x32xf32, #tpu.memory_space<vmem>>, vector<1x8x32xf32>
    %4 = vector.shape_cast %3 : vector<1x8x32xf32> to vector<8x32xf32>
    %c0_3 = arith.constant 0 : index
    %c0_4 = arith.constant 0 : index
    %c0_5 = arith.constant 0 : index
    %5 = vector.load %arg3[%c0_3, %c0_4, %c0_5] : memref<1x8x32xf32, #tpu.memory_space<vmem>>, vector<1x8x32xf32>
    %6 = vector.shape_cast %5 : vector<1x8x32xf32> to vector<8x32xf32>
    %7 = arith.addf %4, %6 : vector<8x32xf32>
    %c0_6 = arith.constant 0 : index
    %c0_7 = arith.constant 0 : index
    %c0_8 = arith.constant 0 : index
    %8 = vector.load %arg4[%c0_6, %c0_7, %c0_8] : memref<1x32x16xf32, #tpu.memory_space<vmem>>, vector<1x32x16xf32>
    %9 = vector.shape_cast %8 : vector<1x32x16xf32> to vector<32x16xf32>
    %cst = arith.constant dense<0.000000e+00> : vector<8x16xf32>
    %10 = tpu.matmul %7, %9, %cst {dimension_numbers = #tpu.dot_dimension_numbers<[1], [0], [0], [1], [0, 0, 1, 1], [], []>} : vector<8x32xf32>, vector<32x16xf32>, vector<8x16xf32> -> vector<8x16xf32>
    %c0_9 = arith.constant 0 : index
    %c0_10 = arith.constant 0 : index
    %c0_11 = arith.constant 0 : index
    %11 = vector.load %arg5[%c0_9, %c0_10, %c0_11] : memref<1x1x16xf32, #tpu.memory_space<vmem>>, vector<1x1x16xf32>
    %12 = vector.shape_cast %11 : vector<1x1x16xf32> to vector<1x16xf32>
    %13 = vector.broadcast %12 : vector<1x16xf32> to vector<8x16xf32>
    %14 = arith.addf %10, %13 : vector<8x16xf32>
    %15 = vector.extract_strided_slice %14 {offsets = [0, 0], sizes = [8, 8], strides = [1, 1]} : vector<8x16xf32> to vector<8x8xf32>
    %16 = vector.extract_strided_slice %14 {offsets = [0, 8], sizes = [8, 8], strides = [1, 1]} : vector<8x16xf32> to vector<8x8xf32>
    %c0_12 = arith.constant 0 : index
    %c0_13 = arith.constant 0 : index
    %c0_14 = arith.constant 0 : index
    %17 = vector.load %arg6[%c0_12, %c0_13, %c0_14] : memref<1x32x8xf32, #tpu.memory_space<vmem>>, vector<1x32x8xf32>
    %18 = vector.shape_cast %17 : vector<1x32x8xf32> to vector<32x8xf32>
    %cst_15 = arith.constant dense<0.000000e+00> : vector<8x8xf32>
    %19 = tpu.matmul %4, %18, %cst_15 {dimension_numbers = #tpu.dot_dimension_numbers<[1], [0], [0], [1], [0, 0, 1, 1], [], []>} : vector<8x32xf32>, vector<32x8xf32>, vector<8x8xf32> -> vector<8x8xf32>
    %c0_16 = arith.constant 0 : index
    %c0_17 = arith.constant 0 : index
    %c0_18 = arith.constant 0 : index
    %20 = vector.load %arg7[%c0_16, %c0_17, %c0_18] : memref<1x1x8xf32, #tpu.memory_space<vmem>>, vector<1x1x8xf32>
    %21 = vector.shape_cast %20 : vector<1x1x8xf32> to vector<1x8xf32>
    %22 = vector.broadcast %21 : vector<1x8xf32> to vector<8x8xf32>
    %23 = arith.addf %19, %22 : vector<8x8xf32>
    "tpu.trace_start"() <{level = 10 : i32, message = "sd,td->st"}> : () -> ()
    %cst_19 = arith.constant dense<0.000000e+00> : vector<8x8xf32>
    %24 = tpu.matmul %15, %16, %cst_19 {dimension_numbers = #tpu.dot_dimension_numbers<[1], [1], [0], [0], [0, 0, 1, 0], [], []>} : vector<8x8xf32>, vector<8x8xf32>, vector<8x8xf32> -> vector<8x8xf32>
    "tpu.trace_stop"() : () -> ()
    %cst_20 = arith.constant dense<0xFF800000> : vector<8xf32>
    %25 = vector.multi_reduction <maximumf>, %24, %cst_20 [1] : vector<8x8xf32> to vector<8xf32>
    %26 = vector.shape_cast %25 : vector<8xf32> to vector<8x1xf32>
    %27 = vector.broadcast %26 : vector<8x1xf32> to vector<8x8xf32>
    %28 = arith.subf %24, %27 : vector<8x8xf32>
    %29 = math.exp %28 : vector<8x8xf32>
    %cst_21 = arith.constant dense<0.000000e+00> : vector<8xf32>
    %30 = vector.multi_reduction <add>, %29, %cst_21 [1] : vector<8x8xf32> to vector<8xf32>
    %31 = vector.shape_cast %30 : vector<8xf32> to vector<8x1xf32>
    %32 = tpu.reciprocal %31 {approx = true} : vector<8x1xf32> -> vector<8x1xf32>
    %33 = vector.broadcast %32 : vector<8x1xf32> to vector<8x8xf32>
    %34 = arith.mulf %29, %33 : vector<8x8xf32>
    %cst_22 = arith.constant dense<0.000000e+00> : vector<8x8xf32>
    %35 = tpu.matmul %34, %23, %cst_22 {dimension_numbers = #tpu.dot_dimension_numbers<[1], [0], [0], [1], [0, 0, 1, 1], [], []>} : vector<8x8xf32>, vector<8x8xf32>, vector<8x8xf32> -> vector<8x8xf32>
    %c0_23 = arith.constant 0 : index
    %c0_24 = arith.constant 0 : index
    %36 = vector.load %arg19[%c0_23, %c0_24] : memref<8x32xf32, #tpu.memory_space<vmem>>, vector<8x32xf32>
    %c0_25 = arith.constant 0 : index
    %c0_26 = arith.constant 0 : index
    %c0_27 = arith.constant 0 : index
    %37 = vector.load %arg8[%c0_25, %c0_26, %c0_27] : memref<1x8x32xf32, #tpu.memory_space<vmem>>, vector<1x8x32xf32>
    %38 = vector.shape_cast %37 : vector<1x8x32xf32> to vector<8x32xf32>
    %cst_28 = arith.constant dense<0.000000e+00> : vector<8x32xf32>
    %39 = tpu.matmul %35, %38, %cst_28 {dimension_numbers = #tpu.dot_dimension_numbers<[1], [0], [0], [1], [0, 0, 1, 1], [], []>} : vector<8x8xf32>, vector<8x32xf32>, vector<8x32xf32> -> vector<8x32xf32>
    %40 = arith.addf %36, %39 : vector<8x32xf32>
    %c0_29 = arith.constant 0 : index
    %c0_30 = arith.constant 0 : index
    %41 = vector.load %arg19[%c0_29, %c0_30] : memref<8x32xf32, #tpu.memory_space<vmem>>, vector<8x32xf32>
    tpu.vector_store %arg19[%c0_29, %c0_30], %40 {strides = array<i32>} : memref<8x32xf32, #tpu.memory_space<vmem>>, vector<8x32xf32>,
    %c3_i32 = arith.constant 3 : i32
    %42 = arith.cmpi eq, %arg1, %c3_i32 : i32
    %43 = arith.extui %42 : i1 to i32
    %c0_i32_31 = arith.constant 0 : i32
    %44 = arith.cmpi ne, %43, %c0_i32_31 : i32
    scf.if %44 {
      %c0_32 = arith.constant 0 : index
      %c0_33 = arith.constant 0 : index
      %45 = vector.load %arg19[%c0_32, %c0_33] : memref<8x32xf32, #tpu.memory_space<vmem>>, vector<8x32xf32>
      %c0_34 = arith.constant 0 : index
      %c0_35 = arith.constant 0 : index
      %46 = vector.load %arg9[%c0_34, %c0_35] : memref<1x32xf32, #tpu.memory_space<vmem>>, vector<1x32xf32>
      %47 = vector.broadcast %46 : vector<1x32xf32> to vector<8x32xf32>
      %48 = arith.addf %45, %47 : vector<8x32xf32>
      %49 = arith.addf %4, %48 : vector<8x32xf32>
      %c0_36 = arith.constant 0 : index
      %c0_37 = arith.constant 0 : index
      %50 = vector.load %arg10[%c0_36, %c0_37] : memref<1x32xf32, #tpu.memory_space<vmem>>, vector<1x32xf32>
      %c0_38 = arith.constant 0 : index
      %c0_39 = arith.constant 0 : index
      %51 = vector.load %arg11[%c0_38, %c0_39] : memref<1x32xf32, #tpu.memory_space<vmem>>, vector<1x32xf32>
      %cst_40 = arith.constant dense<0.000000e+00> : vector<8xf32>
      %52 = vector.multi_reduction <add>, %49, %cst_40 [1] : vector<8x32xf32> to vector<8xf32>
      %53 = vector.shape_cast %52 : vector<8xf32> to vector<8x1xf32>
      %cst_41 = arith.constant 3.200000e+01 : f32
      %54 = vector.broadcast %cst_41 : f32 to vector<8x1xf32>
      %55 = arith.divf %53, %54 : vector<8x1xf32>
      %56 = vector.broadcast %55 : vector<8x1xf32> to vector<8x32xf32>
      %57 = arith.subf %49, %56 : vector<8x32xf32>
      %58 = arith.mulf %57, %57 : vector<8x32xf32>
      %cst_42 = arith.constant dense<0.000000e+00> : vector<8xf32>
      %59 = vector.multi_reduction <add>, %58, %cst_42 [1] : vector<8x32xf32> to vector<8xf32>
      %60 = vector.shape_cast %59 : vector<8xf32> to vector<8x1xf32>
      %cst_43 = arith.constant 3.200000e+01 : f32
      %61 = vector.broadcast %cst_43 : f32 to vector<8x1xf32>
      %62 = arith.divf %60, %61 : vector<8x1xf32>
      %cst_44 = arith.constant 9.99999974E-6 : f32
      %63 = vector.broadcast %cst_44 : f32 to vector<8x1xf32>
      %64 = arith.addf %62, %63 : vector<8x1xf32>
      %65 = math.rsqrt %64 : vector<8x1xf32>
      %66 = vector.broadcast %65 : vector<8x1xf32> to vector<8x32xf32>
      %67 = arith.mulf %57, %66 : vector<8x32xf32>
      %68 = vector.broadcast %50 : vector<1x32xf32> to vector<8x32xf32>
      %69 = arith.mulf %67, %68 : vector<8x32xf32>
      %70 = vector.broadcast %51 : vector<1x32xf32> to vector<8x32xf32>
      %71 = arith.addf %69, %70 : vector<8x32xf32>
      %c0_45 = arith.constant 0 : index
      %c0_46 = arith.constant 0 : index
      %72 = vector.load %arg12[%c0_45, %c0_46] : memref<32x64xf32, #tpu.memory_space<vmem>>, vector<32x64xf32>
      %cst_47 = arith.constant dense<0.000000e+00> : vector<8x64xf32>
      %73 = tpu.matmul %71, %72, %cst_47 {dimension_numbers = #tpu.dot_dimension_numbers<[1], [0], [0], [1], [0, 0, 1, 1], [], []>} : vector<8x32xf32>, vector<32x64xf32>, vector<8x64xf32> -> vector<8x64xf32>
      %c0_48 = arith.constant 0 : index
      %c0_49 = arith.constant 0 : index
      %74 = vector.load %arg13[%c0_48, %c0_49] : memref<1x64xf32, #tpu.memory_space<vmem>>, vector<1x64xf32>
      %75 = vector.broadcast %74 : vector<1x64xf32> to vector<8x64xf32>
      %76 = arith.addf %73, %75 : vector<8x64xf32>
      %cst_50 = arith.constant 0.000000e+00 : f32
      %77 = vector.broadcast %cst_50 : f32 to vector<8x64xf32>
      %78 = arith.maximumf %76, %77 : vector<8x64xf32>
      %c0_51 = arith.constant 0 : index
      %c0_52 = arith.constant 0 : index
      %79 = vector.load %arg14[%c0_51, %c0_52] : memref<64x32xf32, #tpu.memory_space<vmem>>, vector<64x32xf32>
      %cst_53 = arith.constant dense<0.000000e+00> : vector<8x32xf32>
      %80 = tpu.matmul %78, %79, %cst_53 {dimension_numbers = #tpu.dot_dimension_numbers<[1], [0], [0], [1], [0, 0, 1, 1], [], []>} : vector<8x64xf32>, vector<64x32xf32>, vector<8x32xf32> -> vector<8x32xf32>
      %c0_54 = arith.constant 0 : index
      %c0_55 = arith.constant 0 : index
      %81 = vector.load %arg15[%c0_54, %c0_55] : memref<1x32xf32, #tpu.memory_space<vmem>>, vector<1x32xf32>
      %82 = vector.broadcast %81 : vector<1x32xf32> to vector<8x32xf32>
      %83 = arith.addf %80, %82 : vector<8x32xf32>
      %84 = arith.addf %71, %83 : vector<8x32xf32>
      %c0_56 = arith.constant 0 : index
      %c0_57 = arith.constant 0 : index
      %85 = vector.load %arg16[%c0_56, %c0_57] : memref<1x32xf32, #tpu.memory_space<vmem>>, vector<1x32xf32>
      %c0_58 = arith.constant 0 : index
      %c0_59 = arith.constant 0 : index
      %86 = vector.load %arg17[%c0_58, %c0_59] : memref<1x32xf32, #tpu.memory_space<vmem>>, vector<1x32xf32>
      %cst_60 = arith.constant dense<0.000000e+00> : vector<8xf32>
      %87 = vector.multi_reduction <add>, %84, %cst_60 [1] : vector<8x32xf32> to vector<8xf32>
      %88 = vector.shape_cast %87 : vector<8xf32> to vector<8x1xf32>
      %cst_61 = arith.constant 3.200000e+01 : f32
      %89 = vector.broadcast %cst_61 : f32 to vector<8x1xf32>
      %90 = arith.divf %88, %89 : vector<8x1xf32>
      %91 = vector.broadcast %90 : vector<8x1xf32> to vector<8x32xf32>
      %92 = arith.subf %84, %91 : vector<8x32xf32>
      %93 = arith.mulf %92, %92 : vector<8x32xf32>
      %cst_62 = arith.constant dense<0.000000e+00> : vector<8xf32>
      %94 = vector.multi_reduction <add>, %93, %cst_62 [1] : vector<8x32xf32> to vector<8xf32>
      %95 = vector.shape_cast %94 : vector<8xf32> to vector<8x1xf32>
      %cst_63 = arith.constant 3.200000e+01 : f32
      %96 = vector.broadcast %cst_63 : f32 to vector<8x1xf32>
      %97 = arith.divf %95, %96 : vector<8x1xf32>
      %cst_64 = arith.constant 9.99999974E-6 : f32
      %98 = vector.broadcast %cst_64 : f32 to vector<8x1xf32>
      %99 = arith.addf %97, %98 : vector<8x1xf32>
      %100 = math.rsqrt %99 : vector<8x1xf32>
      %101 = vector.broadcast %100 : vector<8x1xf32> to vector<8x32xf32>
      %102 = arith.mulf %92, %101 : vector<8x32xf32>
      %103 = vector.broadcast %85 : vector<1x32xf32> to vector<8x32xf32>
      %104 = arith.mulf %102, %103 : vector<8x32xf32>
      %105 = vector.broadcast %86 : vector<1x32xf32> to vector<8x32xf32>
      %106 = arith.addf %104, %105 : vector<8x32xf32>
      %c0_65 = arith.constant 0 : index
      %c0_66 = arith.constant 0 : index
      %c0_67 = arith.constant 0 : index
      %107 = vector.load %arg18[%c0_65, %c0_66, %c0_67] : memref<1x8x32xf32, #tpu.memory_space<vmem>>, vector<1x8x32xf32>
      %108 = vector.shape_cast %107 : vector<1x8x32xf32> to vector<8x32xf32>
      %109 = vector.shape_cast %106 : vector<8x32xf32> to vector<1x8x32xf32>
      tpu.vector_store %arg18[%c0_65, %c0_66, %c0_67], %109 {strides = array<i32>} : memref<1x8x32xf32, #tpu.memory_space<vmem>>, vector<1x8x32xf32>,
    } else {
    }
    return
  }
  func.func @transform_0(%arg0: i32, %arg1: i32) -> (i32, i32, i32) {
    %c0_i32 = arith.constant 0 : i32
    %c0_i32_0 = arith.constant 0 : i32
    %c0_i32_1 = arith.constant 0 : i32
    return %arg0, %c0_i32, %c0_i32_0 : i32, i32, i32
  }
  func.func @transform_1(%arg0: i32, %arg1: i32) -> (i32, i32, i32) {
    %c0_i32 = arith.constant 0 : i32
    %c0_i32_0 = arith.constant 0 : i32
    %c0_i32_1 = arith.constant 0 : i32
    return %arg0, %c0_i32, %c0_i32_0 : i32, i32, i32
  }
  func.func @transform_2(%arg0: i32, %arg1: i32) -> (i32, i32, i32) {
    %c0_i32 = arith.constant 0 : i32
    %c0_i32_0 = arith.constant 0 : i32
    %c0_i32_1 = arith.constant 0 : i32
    return %arg1, %c0_i32, %c0_i32_0 : i32, i32, i32
  }
  func.func @transform_3(%arg0: i32, %arg1: i32) -> (i32, i32, i32) {
    %c0_i32 = arith.constant 0 : i32
    %c0_i32_0 = arith.constant 0 : i32
    %c0_i32_1 = arith.constant 0 : i32
    return %arg1, %c0_i32, %c0_i32_0 : i32, i32, i32
  }
  func.func @transform_4(%arg0: i32, %arg1: i32) -> (i32, i32, i32) {
    %c0_i32 = arith.constant 0 : i32
    %c0_i32_0 = arith.constant 0 : i32
    %c0_i32_1 = arith.constant 0 : i32
    return %arg1, %c0_i32, %c0_i32_0 : i32, i32, i32
  }
  func.func @transform_5(%arg0: i32, %arg1: i32) -> (i32, i32, i32) {
    %c0_i32 = arith.constant 0 : i32
    %c0_i32_0 = arith.constant 0 : i32
    %c0_i32_1 = arith.constant 0 : i32
    return %arg1, %c0_i32, %c0_i32_0 : i32, i32, i32
  }
  func.func @transform_6(%arg0: i32, %arg1: i32) -> (i32, i32, i32) {
    %c0_i32 = arith.constant 0 : i32
    %c0_i32_0 = arith.constant 0 : i32
    %c0_i32_1 = arith.constant 0 : i32
    return %arg1, %c0_i32, %c0_i32_0 : i32, i32, i32
  }
  func.func @transform_7(%arg0: i32, %arg1: i32) -> (i32, i32) {
    %c0_i32 = arith.constant 0 : i32
    %c0_i32_0 = arith.constant 0 : i32
    %c0_i32_1 = arith.constant 0 : i32
    return %c0_i32, %c0_i32_0 : i32, i32
  }
  func.func @transform_8(%arg0: i32, %arg1: i32) -> (i32, i32) {
    %c0_i32 = arith.constant 0 : i32
    %c0_i32_0 = arith.constant 0 : i32
    %c0_i32_1 = arith.constant 0 : i32
    return %c0_i32, %c0_i32_0 : i32, i32
  }
  func.func @transform_9(%arg0: i32, %arg1: i32) -> (i32, i32) {
    %c0_i32 = arith.constant 0 : i32
    %c0_i32_0 = arith.constant 0 : i32
    %c0_i32_1 = arith.constant 0 : i32
    return %c0_i32, %c0_i32_0 : i32, i32
  }
  func.func @transform_10(%arg0: i32, %arg1: i32) -> (i32, i32) {
    %c0_i32 = arith.constant 0 : i32
    %c0_i32_0 = arith.constant 0 : i32
    %c0_i32_1 = arith.constant 0 : i32
    return %c0_i32, %c0_i32_0 : i32, i32
  }
  func.func @transform_11(%arg0: i32, %arg1: i32) -> (i32, i32) {
    %c0_i32 = arith.constant 0 : i32
    %c0_i32_0 = arith.constant 0 : i32
    %c0_i32_1 = arith.constant 0 : i32
    return %c0_i32, %c0_i32_0 : i32, i32
  }
  func.func @transform_12(%arg0: i32, %arg1: i32) -> (i32, i32) {
    %c0_i32 = arith.constant 0 : i32
    %c0_i32_0 = arith.constant 0 : i32
    %c0_i32_1 = arith.constant 0 : i32
    return %c0_i32, %c0_i32_0 : i32, i32
  }
  func.func @transform_13(%arg0: i32, %arg1: i32) -> (i32, i32) {
    %c0_i32 = arith.constant 0 : i32
    %c0_i32_0 = arith.constant 0 : i32
    %c0_i32_1 = arith.constant 0 : i32
    return %c0_i32, %c0_i32_0 : i32, i32
  }
  func.func @transform_14(%arg0: i32, %arg1: i32) -> (i32, i32) {
    %c0_i32 = arith.constant 0 : i32
    %c0_i32_0 = arith.constant 0 : i32
    %c0_i32_1 = arith.constant 0 : i32
    return %c0_i32, %c0_i32_0 : i32, i32
  }
  func.func @transform_15(%arg0: i32, %arg1: i32) -> (i32, i32) {
    %c0_i32 = arith.constant 0 : i32
    %c0_i32_0 = arith.constant 0 : i32
    %c0_i32_1 = arith.constant 0 : i32
    return %c0_i32, %c0_i32_0 : i32, i32
  }
  func.func @transform_16(%arg0: i32, %arg1: i32) -> (i32, i32, i32) {
    %c0_i32 = arith.constant 0 : i32
    %c0_i32_0 = arith.constant 0 : i32
    %c0_i32_1 = arith.constant 0 : i32
    return %arg0, %c0_i32, %c0_i32_0 : i32, i32, i32
  }
}

</mosaic_0001>

<bundles_post_ra>
// kernel: tpu_custom_call.1
= control target key start
LH: loop header
LB: loop body
LE: loop exit
PB: predicated region body
PF: predicated region fallthrough
CT: control target
= control target key end

     0   :  { %s2155_s0 = inlined_call_operand.vmem [shape: f32[2,8,32], index: 0, kind: input, shape index: {}]   ;;  %s2156_s1 = inlined_call_operand.vmem [shape: f32[2,8,32], index: 1, kind: input, shape index: {}]   ;;  %s2157_s2 = inlined_call_operand.vmem [shape: f32[4,32,16], index: 2, kind: input, shape index: {}]   ;;  %s2158_s3 = inlined_call_operand.vmem [shape: f32[4,1,16], index: 3, kind: input, shape index: {}]   ;;  %s2159_s4 = inlined_call_operand.vmem [shape: f32[4,32,8], index: 4, kind: input, shape index: {}]   ;;  %s2160_s5 = inlined_call_operand.vmem [shape: f32[4,1,8], index: 5, kind: input, shape index: {}]   ;;  %s2161_s6 = inlined_call_operand.vmem [shape: f32[4,8,32], index: 6, kind: input, shape index: {}]   ;;  %s2162_s7 = inlined_call_operand.vmem [shape: f32[1,32], index: 7, kind: input, shape index: {}]   ;;  %s2163_s8 = inlined_call_operand.vmem [shape: f32[1,32], index: 8, kind: input, shape index: {}]   ;;  %s2164_s9 = inlined_call_operand.vmem [shape: f32[1,32], index: 9, kind: input, shape index: {}]   ;;  %s2165_s10 = inlined_call_operand.vmem [shape: f32[32,64], index: 10, kind: input, shape index: {}]   ;;  %s2166_s11 = inlined_call_operand.vmem [shape: f32[1,64], index: 11, kind: input, shape index: {}]   ;;  %s2167_s12 = inlined_call_operand.vmem [shape: f32[64,32], index: 12, kind: input, shape index: {}]   ;;  %s2168_s13 = inlined_call_operand.vmem [shape: f32[1,32], index: 13, kind: input, shape index: {}]   ;;  %s2169_s14 = inlined_call_operand.vmem [shape: f32[1,32], index: 14, kind: input, shape index: {}]   ;;  %s2170_s15 = inlined_call_operand.vmem [shape: f32[1,32], index: 15, kind: input, shape index: {}]   ;;  %s2171_s16 = inlined_call_operand.hbm [shape: f32[2,8,32], index: 16, kind: output, shape index: {}]  }
   0x1   :  { %2186 = sst [smem:[#allocation18_spill]] %s2155_s0 }
   0x2   :  { %2187 = sst [smem:[#allocation19_spill]] %s2156_s1 }
   0x3   :  { %2188 = sst [smem:[#allocation20_spill]] %s2164_s9 }
   0x4   :  { %2189 = sst [smem:[#allocation21_spill]] %s2166_s11 }
   0x5   :  { %2190 = sst [smem:[#allocation22_spill]] %s2168_s13 }
   0x6   :  { %2191 = sst [smem:[#allocation23_spill]] %s2169_s14 }
   0x7   :  { %2192 = sst [smem:[#allocation24_spill]] %s2170_s15 }
   0x8   :  { %2193 = sst [smem:[#allocation25_spill]] %s2171_s16 }
   0x9   :  { %21 = vsyncpa [#allocation4], 0 }
   0xa   :  { %23 = vsyncpa [#allocation4 + $0x1], 0  ;;  %s1889_s21 = smov 0   ;;  %s1891_s22 = smov 0  }
   0xb   :  { %s1893_s23 = smov 0   ;;  %s1895_s24 = smov 0  }
   0xc   :  { %s1897_s25 = smov 0   ;;  %s1899_s26 = smov 0  }
   0xd   :  { %s1901_s27 = smov 0   ;;  %s1903_s28 = smov 0  }
   0xe LB: > { %2194 = sst [smem:[#allocation6_spill]] %s1765_s21  ;;  %s1447_s29 = sadd.s32 4294967295, %s1793_s28   ;;  %s1793_s28 = sphi %s1903_s28, %s29_s28   ;;  %s1789_s27 = sphi %s1901_s27, %s2230_s27   ;;  %s1785_s26 = sphi %s1899_s26, %s2229_s26   ;;  %s1781_s25 = sphi %s1897_s25, %s2228_s25   ;;  %s1777_s24 = sphi %s1895_s24, %s2227_s24   ;;  %s1773_s23 = sphi %s1893_s23, %s2226_s23   ;;  %s1769_s22 = sphi %s1891_s22, %s2225_s22   ;;  %s1765_s21 = sphi %s1889_s21, %s2224_s21  }
   0xf   : > { %2195 = sst [smem:[#allocation7_spill]] %s1769_s22  ;;  %s1448_s30 = sadd.s32 4294967294, %s1793_s28  }
  0x10   : > { %2196 = sst [smem:[#allocation8_spill]] %s1773_s23  ;;  %s38_s0 = sadd.s32 1, %s1785_s26 }
  0x11   : > { %2197 = sst [smem:[#allocation9_spill]] %s1781_s25  ;;  %p39_p0 = scmp.ge.s32.totalorder %s38_s0, 4 }
  0x12   : > { %2198 = sst [smem:[#allocation10_spill]] %s1785_s26  ;;  %s41_s17 = sadd.s32 1, %s1789_s27 }
  0x13   : > { %2199 = sst [smem:[#allocation11_spill]] %s1789_s27  ;;  %p429_p1 = scmp.ne.s32.totalorder %s1773_s23, %s1769_s22 }
  0x14   : > { %2200 = sst [smem:[#allocation12_spill]] %s1793_s28  ;;  %p430_p2 = scmp.eq.s32.totalorder %s1447_s29, 7 }
  0x15   : > { %s2232_s0 = smov (%p39_p0, %s38_s0), 0  ;;  %s2234_s17 = smov (!%p39_p0, %s41_s17), %s1789_s27 }
  0x16   : > { %2201 = sst [smem:[#allocation13_spill]] %s2232_s0  ;;  %p1938_p3 = por %p430_p2, %p429_p1 }
  0x17   : > { %p435_p4 = scmp.ne.s32.totalorder %s1769_s22, %s1765_s21  ;;  %p43_p5 = scmp.ge.s32.totalorder %s2234_s17, 2 }
  0x18   : > { %s2202_s18 = scalar_select %p1938_p3, 1, 0 }
  0x19   : > { %p436_p6 = scmp.eq.s32.totalorder %s1448_s30, 7  ;;  %p1451_p7 = scmp.ge.s32.totalorder %s1793_s28, 1 }
  0x1a   : > { %2203 = sst [smem:[#allocation14_spill]] %s2202_s18  ;;  %p530_p8 = scmp.lt.s32.totalorder %s1793_s28, 9 }
  0x1b   : > { %s2236_s17 = smov (%p43_p5, %s2234_s17), 0  ;;  %p1948_p9 = por %p436_p6, %p435_p4 }
  0x1c   : > { %2204 = sst [smem:[#allocation15_spill]] %s2236_s17  ;;  %p531_p10 = pnand %p1451_p7, %p530_p8 }
  0x1d   : > { %s2205_s19 = scalar_select %p1948_p9, 1, 0 }
  0x1e   : > { %s416_s20 = ssub.s32 %s1789_s27, %s2236_s17  ;;  %s419_s29 = sadd.s32 1, %s1773_s23 }
  0x1f   : > { %2206 = sst [smem:[#allocation16_spill]] %s2205_s19  ;;  %p417_p11 = scmp.eq.s32.totalorder %s416_s20, 0 }
  0x20   : > { %534 = sbr.rel (%p531_p10) target bundleno = 2439 (0x987), region = 84  ;;  %s2181_s30 = sand.u32 (!%p531_p10), 1, %s1769_s22  }
  0x21   : > { %s1956_s0 = scalar_select %p417_p11, %s1773_s23, %s419_s29  }
  0x22   : > { %p603_p12 = scmp.lt.s32.totalorder (!%p531_p10), %s1781_s25, 1  ;;  %s1962_s26 = sshll.u32 (!%p531_p10), %s2181_s30, 3 }
  0x23   : > { %2207 = sst [smem:[#allocation17_spill]] %s1956_s0  ;;  %p611_p13 = scmp.lt.s32.totalorder (!%p531_p10), %s1777_s24, 3 }
  0x24   : > { %s2208_s0 = sld [smem:[#allocation18_spill]] (!%p531_p10)  ;;  %s2209_s1 = sld [smem:[#allocation19_spill]] (!%p531_p10) }
  0x25   : > { %s602_s22 = scalar_lea.vmem (!%p531_p10), [#allocation3], %s1962_s26  ;;  %p1460_p0 = scmp.ne.s32.totalorder (!%p531_p10), %s1777_s24, 0 }
  0x27   : > { %s604_s19 = scalar_select %p603_p12, %s1781_s25, 1 }
  0x28   : > { %s1967_s17 = scalar_select %p611_p13, %s1777_s24, 3 }
  0x29   : > { %s1453_s20 = sshll.u32 %s604_s19, 3  ;;  %634 = sbr.rel (%p1460_p0) target bundleno = 48 (0x30), region = 88  ;;  %vm635_vm0 = vcmask (!%p1460_p0), 261120   ;;  %v1795_v0 = vmov (!%p1460_p0), 0.0  }
  0x2a   : > { %s606_s23 = scalar_lea.vmem %s2208_s0, %s1453_s20  ;;  %s610_s16 = scalar_lea.vmem %s2209_s1, %s1453_s20  ;;  %636 = vst.msk [vmem:[#allocation2] sm:$0xff] (!%p1460_p0), %vm635_vm0, %v1795_v0 }
  0x2b   : > { %s1483_s30 = sshll.u32 %s1967_s17, 5  ;;  %s618_s25 = scalar_lea.vmem %s2158_s3, %s1967_s17 }
  0x2c   : > { %s615_s13 = scalar_lea.vmem %s2157_s2, %s1483_s30  ;;  %s1986_s19 = scalar_lea.vmem %s2159_s4, %s1483_s30 }
  0x2d   : > { %s626_s29 = scalar_lea.vmem %s2160_s5, %s1967_s17  ;;  %s1459_s21 = sshll.u32 %s1967_s17, 3 }
  0x2e   : > { %s1996_s1 = scalar_lea.vmem %s2161_s6, %s1459_s21 }
  0x30 PF: > { %v640_v1 = vld [vmem:[%s615_s13] sm:$0xff]  ;;  %v641_v2 = vld [vmem:[%s615_s13 + $0x8] sm:$0xff]  ;;  %v642_v3 = vld [vmem:[%s615_s13 + $0x10] sm:$0xff]  ;;  %v1796_v4 = vmov 0.0|0.0   ;;  %vm1797_vm1 = vmmov 0   ;;  %v1798_v7 = vmov 0.0  }
  0x31   : > { %1582 = vmatprep.subr.bf16.mxu0 %v1796_v4  ;;  %v1583_v5 = vpack.c.bf16 %v641_v2, %v640_v1  ;;  %v643_v6 = vld [vmem:[%s615_s13 + $0x18] sm:$0xff]  ;;  %1523 = vmatprep.mubr.msk.f32.mxu0 %vm1797_vm1, %v1798_v7  ;;  %v2002_v9 = vld [vmem:[%s606_s23] sm:$0xff]  ;;  %vm651_vm2 = vcmask 261120   ;;  %s1799_s13 = smov 120   ;;  %vm812_vm3 = vcmask 64512   ;;  %v726_v18 = vld [vmem:[%s1986_s19 + $0x8] sm:$0xff] }
  0x32   : > { %1588 = vmatprep.subr.bf16.mxu1 %v1796_v4  ;;  %1534 = vmatprep.mubr.msk.f32.mxu1 %vm1797_vm1, %v1798_v7  ;;  %v1586_v8 = vpack.c.bf16 %v643_v6, %v642_v3  ;;  %v638_v10 = vld [vmem:[%s610_s16] sm:$0xff]  ;;  %v727_v19 = vld [vmem:[%s1986_s19 + $0x10] sm:$0xff]  ;;  %v728_v21 = vld [vmem:[%s1986_s19 + $0x18] sm:$0xff]  ;;  %p1469_p1 = scmp.ne.s32.totalorder %s1777_s24, 3 }
  0x33   : > { %1584 = vmatpush3.bf16.msra.mxu0 %v1583_v5  ;;  %v639_v11 = vadd.f32 %v638_v10, %v2002_v9  ;;  %v1461_v12 = vld [vmem:[%s618_s25] ss:$0 sm:$0xff]  ;;  %v1592_v22 = vpack.c.bf16 %v728_v21, %v727_v19  ;;  %v1093_v56 = vld [vmem:[%s2165_s10 + $0x8] sm:$0xff] (!%p1469_p1)  ;;  %v1094_v57 = vld [vmem:[%s2165_s10 + $0x10] sm:$0xff] (!%p1469_p1)  ;;  %v1800_v58 = vmov (!%p1469_p1), 0.0|0.0   ;;  %vm1801_vm4 = vmmov (!%p1469_p1), 0  }
  0x34   : > { %1585 = vmatprep.subr.bf16.mxu0 %v1796_v4  ;;  %v725_v17 = vld [vmem:[%s1986_s19] sm:$0xff]  ;;  %v1095_v60 = vld [vmem:[%s2165_s10 + $0x18] sm:$0xff] (!%p1469_p1)  ;;  %v1802_v61 = vmov (!%p1469_p1), 0.0   ;;  %v1178_v0 = vld [vmem:[%s2167_s12 + $0x8] sm:$0xff] (!%p1469_p1)  ;;  %s2210_s18 = sld [smem:[#allocation20_spill]] (!%p1469_p1)  ;;  %s2211_s28 = sld [smem:[#allocation21_spill]] (!%p1469_p1) }
  0x35   : > { %v1589_v20 = vpack.c.bf16 %v726_v18, %v725_v17  ;;  %v1463_v32 = vld [vmem:[%s626_s29] ss:$0 sm:$0xff]  ;;  %v1598_v62 = vpack.c.bf16 (!%p1469_p1), %v1095_v60, %v1094_v57  ;;  %v1179_v1 = vld [vmem:[%s2167_s12 + $0x10] sm:$0xff] (!%p1469_p1)  ;;  %v1180_v3 = vld [vmem:[%s2167_s12 + $0x18] sm:$0xff] (!%p1469_p1)  ;;  %vm1192_vm5 = vcmask (!%p1469_p1), 523264   ;;  %s2212_s11 = sld [smem:[#allocation22_spill]] (!%p1469_p1) }
  0x36   : > { %v972_v35 = vld [vmem:[%s1996_s1] sm:$0xff]  ;;  %v1182_v6 = vld [vmem:[%s2167_s12 + $0x28] sm:$0xff] (!%p1469_p1)  ;;  %v1183_v17 = vld [vmem:[%s2167_s12 + $0x30] sm:$0xff] (!%p1469_p1)  ;;  %s2213_s15 = sld [smem:[#allocation23_spill]] (!%p1469_p1)  ;;  %s2214_s23 = sld [smem:[#allocation24_spill]] (!%p1469_p1) }
  0x37   : > { %1587 = vmatpush3.bf16.msra.mxu0 %v1586_v8  ;;  %1590 = vmatpush3.bf16.msra.mxu1 %v1589_v20  ;;  %v971_v41 = vld [vmem:[#allocation2] sm:$0xff]  ;;  %v1184_v18 = vld [vmem:[%s2167_s12 + $0x38] sm:$0xff] (!%p1469_p1) }
  0x38   : > { %1537 = vmatprep.subr.mxu0 %v1798_v7  ;;  %1591 = vmatprep.subr.bf16.mxu1 %v1796_v4  ;;  %v1470_v46 = vld [vmem:[%s2162_s7] ss:$0 sm:$0xff] (!%p1469_p1)  ;;  %v1604_v4 = vpack.c.bf16 (!%p1469_p1), %v1180_v3, %v1179_v1  ;;  %v1610_v19 = vpack.c.bf16 (!%p1469_p1), %v1184_v18, %v1183_v17 }
  0x39   : > { %v1092_v55 = vld [vmem:[%s2165_s10] sm:$0xff] (!%p1469_p1) }
  0x3a   : > { %1524 = vmatmul.mubr.msk.f32.vlgmr.msra.gmra.mrb[0].mxu0 %vm651_vm2, %v639_v11  ;;  %v1595_v59 = vpack.c.bf16 (!%p1469_p1), %v1093_v56, %v1092_v55  ;;  %v1177_v63 = vld [vmem:[%s2167_s12] sm:$0xff] (!%p1469_p1) }
  0x3b   : > { %1539 = vmatprep.mubr.msk.f32.mxu0 %vm1797_vm1, %v1798_v7  ;;  %1593 = vmatpush3.bf16.msra.mxu1 %v1592_v22  ;;  %v1601_v2 = vpack.c.bf16 (!%p1469_p1), %v1178_v0, %v1177_v63  ;;  %v1181_v5 = vld [vmem:[%s2167_s12 + $0x20] sm:$0xff] (!%p1469_p1) }
  0x3c   : > { %1542 = vmatprep.subr.mxu1 %v1798_v7  ;;  %v1473_v20 = vld [vmem:[%s2211_s28] ss:$0 sm:$0xff] (!%p1469_p1) }
  0x3e   : > { %1535 = vmatmul.mubr.msk.f32.vlgmr.msra.gmra.mrb[0].mxu1 %vm651_vm2, %v2002_v9 }
  0x3f   : > { %1544 = vmatprep.mubr.msk.f32.mxu1 %vm1797_vm1, %v1798_v7 }
 0x10d   : > { %v721_v13 = vpop.f32.mrb[0].mxu0 }
 0x10e   : > { %v722_v14 = vadd.f32 %v1461_v12, %v721_v13  ;;  %v1525_v15 = vpop.f32.mrb[1].mxu0  ;;  %v1471_v12 = vld [vmem:[%s2163_s8] ss:$0 sm:$0xff] (!%p1469_p1) }
 0x110   : > { %810 = vrot.lane.b32.xlu0 %v722_v14, %s1799_s13 }
 0x111   : > { %v805_v31 = vpop.f32.mrb[0].mxu1 }
 0x112   : > { %v1536_v33 = vpop.f32.mrb[1].mxu1  ;;  %v806_v34 = vadd.f32 %v1463_v32, %v805_v31 }
 0x114   : > { %1543 = vmatpush3.msra.mxu1 %v806_v34 }
 0x115   : > { %1600 = vmatprep.subr.bf16.mxu1 (!%p1469_p1), %v1800_v58 }
 0x182   : > { %v811_v16 = vpop.permute.xlu0 %810 }
 0x183   : > { %1538 = vmatpush3.xpose.msk.msra.mxu0 %vm812_vm3, %v811_v16 }
 0x184   : > { %1547 = vmatprep.subr.mxu0 %v1798_v7 }
 0x186   : > { %1540 = vmatmul.mubr.msk.f32.vlgmr.msra.gmra.mrb[2].mxu0 %vm812_vm3, %v722_v14  ;;  %v1472_v14 = vld [vmem:[%s2210_s18] ss:$0 sm:$0xff] (!%p1469_p1) }
 0x187   : > { %1549 = vmatprep.mubr.msk.f32.mxu0 %vm1797_vm1, %v1798_v7  ;;  %1548 = vmatpush3.msra.mxu0 %v972_v35  ;;  %v1607_v7 = vpack.c.bf16 (!%p1469_p1), %v1182_v6, %v1181_v5 }
 0x188   : > { %1594 = vmatprep.subr.bf16.mxu0 (!%p1469_p1), %v1800_v58 }
 0x259   : > { %v883_v23 = vpop.f32.mrb[2].mxu0 }
 0x25a   : > { %v1541_v24 = vpop.f32.mrb[3].mxu0  ;;  %v887_v25 = vsel %vm812_vm3, %v883_v23, -inf }
 0x25b   : > { %888 = vmax.xlane.f32.xlu0 %v887_v25  ;;  %v1475_v25 = vld [vmem:[%s2212_s11] ss:$0 sm:$0xff] (!%p1469_p1) }
 0x2e8   : > { %v889_v26 = vpop.xlane.xlu0 %888 }
 0x2e9   : > { %v890_v27 = vsub.f32 %v883_v23, %v889_v26 }
 0x2eb   : > { %v891_v28 = vmul.f32 1.442695, %v890_v27 }
 0x2ed   : > { %1691 = vpow2.f32 %v891_v28 }
 0x2f7   : > { %v1692_v29 = vpop.eup %1691 }
 0x2f8   : > { %v893_v30 = vsel %vm812_vm3, %v1692_v29, 0.0 }
 0x2f9   : > { %894 = vadd.xlane.f32.xlu1 %v893_v30 }
 0x386   : > { %v895_v36 = vpop.xlane.xlu1 %894 }
 0x387   : > { %1693 = vrcp.f32 %v895_v36 }
 0x391   : > { %v1694_v37 = vpop.eup %1693 }
 0x392   : > { %v897_v38 = vmul.f32 %v1694_v37, %v1692_v29 }
 0x394   : > { %1545 = vmatmul.mubr.msk.f32.vlgmr.msra.gmra.mrb[2].mxu1 %vm812_vm3, %v897_v38 }
 0x395   : > { %1579 = vmatprep.mubr.msk.f32.mxu1 (!%p1469_p1), %vm1801_vm4, %v1802_v61  ;;  %1602 = vmatpush3.bf16.msra.mxu1 (!%p1469_p1), %v1601_v2 }
 0x396   : > { %1603 = vmatprep.subr.bf16.mxu1 (!%p1469_p1), %v1800_v58 }
 0x399   : > { %1605 = vmatpush3.bf16.msra.mxu1 (!%p1469_p1), %v1604_v4 }
 0x39a   : > { %1606 = vmatprep.subr.bf16.mxu1 (!%p1469_p1), %v1800_v58 }
 0x39d   : > { %1608 = vmatpush3.bf16.msra.mxu1 (!%p1469_p1), %v1607_v7 }
 0x39e   : > { %1609 = vmatprep.subr.bf16.mxu1 (!%p1469_p1), %v1800_v58 }
 0x3a1   : > { %1611 = vmatpush3.bf16.msra.mxu1 (!%p1469_p1), %v1610_v19 }
 0x467   : > { %v967_v39 = vpop.f32.mrb[2].mxu1 }
 0x468   : > { %v1546_v40 = vpop.f32.mrb[3].mxu1  ;;  %1550 = vmatmul.mubr.msk.f32.vlgmr.msra.gmra.mrb[4].mxu0 %vm812_vm3, %v967_v39 }
 0x469   : > { %1560 = vmatprep.mubr.msk.f32.mxu0 (!%p1469_p1), %vm1801_vm4, %v1802_v61  ;;  %1596 = vmatpush3.bf16.msra.mxu0 (!%p1469_p1), %v1595_v59  ;;  %v1477_v40 = vld [vmem:[%s2213_s15] ss:$0 sm:$0xff] (!%p1469_p1) }
 0x46a   : > { %1597 = vmatprep.subr.bf16.mxu0 (!%p1469_p1), %v1800_v58 }
 0x46d   : > { %1599 = vmatpush3.bf16.msra.mxu0 (!%p1469_p1), %v1598_v62 }
 0x538   : > { %1051 = sbr.rel (%p1469_p1) target bundleno = 2413 (0x96d), region = 92 }
 0x53b   : > { %v1042_v42 = vpop.f32.mrb[4].mxu0 }
 0x53c   : > { %v1046_v43 = vadd.f32 %v1042_v42, %v971_v41  ;;  %v1551_v44 = vpop.f32.mrb[5].mxu0  ;;  %v1478_v42 = vld [vmem:[%s2214_s23] ss:$0 sm:$0xff] (!%p1469_p1) }
 0x53e   : > { %1047 = vst.msk [vmem:[#allocation2] sm:$0xff] %vm651_vm2, %v1046_v43 }
 0x545   : > { %v1052_v45 = vld [vmem:[#allocation2] sm:$0xff] }
 0x546   : > { %v1060_v47 = vadd.f32 %v1470_v46, %v1052_v45 }
 0x548   : > { %v1061_v48 = vadd.f32 %v1060_v47, %v2002_v9 }
 0x54a   : > { %v1064_v49 = vsel %vm651_vm2, %v1061_v48, 0.0 }
 0x54b   : > { %1065 = vadd.xlane.f32.xlu0 %v1064_v49 }
 0x5d8   : > { %v1066_v50 = vpop.xlane.xlu0 %1065 }
 0x5d9   : > { %v1068_v51 = vmul.f32 0.03125, %v1066_v50 }
 0x5db   : > { %v1069_v52 = vsub.f32 %v1061_v48, %v1068_v51 }
 0x5dd   : > { %v1070_v53 = vmul.f32 %v1069_v52, %v1069_v52 }
 0x5df   : > { %v1071_v54 = vsel %vm651_vm2, %v1070_v53, 0.0 }
 0x5e0   : > { %1072 = vadd.xlane.f32.xlu0 %v1071_v54 }
 0x66d   : > { %v1073_v8 = vpop.xlane.xlu0 %1072 }
 0x66e   : > { %v1074_v9 = vmul.f32 0.03125, %v1073_v8 }
 0x670   : > { %v1075_v10 = vadd.f32 1e-05, %v1074_v9 }
 0x672   : > { %1695 = vrsqrt.f32 %v1075_v10 }
 0x67c   : > { %v1696_v11 = vpop.eup %1695 }
 0x67d   : > { %v1077_v13 = vmul.f32 %v1696_v11, %v1069_v52 }
 0x67f   : > { %v1084_v15 = vmul.f32 %v1471_v12, %v1077_v13 }
 0x681   : > { %v1091_v16 = vadd.f32 %v1472_v14, %v1084_v15 }
 0x683   : > { %1561 = vmatmul.mubr.msk.f32.vlgmr.msra.gmra.mrb[0].mxu0 %vm651_vm2, %v1091_v16 }
 0x756   : > { %v1172_v21 = vpop.f32.mrb[0].mxu0 }
 0x757   : > { %v1173_v22 = vadd.f32 %v1473_v20, %v1172_v21  ;;  %v1562_v23 = vpop.f32.mrb[1].mxu0 }
 0x759   : > { %v1176_v24 = vmax.f32 %v1173_v22, 0.0 }
 0x75b   : > { %1580 = vmatmul.mubr.msk.f32.vlgmr.msra.gmra.mrb[0].mxu1 %vm1192_vm5, %v1176_v24 }
 0x82e   : > { %v1262_v26 = vpop.f32.mrb[0].mxu1 }
 0x82f   : > { %v1263_v27 = vadd.f32 %v1475_v25, %v1262_v26  ;;  %v1581_v28 = vpop.f32.mrb[1].mxu1 }
 0x831   : > { %v1266_v29 = vadd.f32 %v1263_v27, %v1091_v16 }
 0x833   : > { %v1269_v30 = vsel %vm651_vm2, %v1266_v29, 0.0 }
 0x834   : > { %1270 = vadd.xlane.f32.xlu1 %v1269_v30 }
 0x8c1   : > { %v1271_v31 = vpop.xlane.xlu1 %1270 }
 0x8c2   : > { %v1272_v32 = vmul.f32 0.03125, %v1271_v31 }
 0x8c4   : > { %v1273_v33 = vsub.f32 %v1266_v29, %v1272_v32 }
 0x8c6   : > { %v1274_v34 = vmul.f32 %v1273_v33, %v1273_v33 }
 0x8c8   : > { %v1275_v35 = vsel %vm651_vm2, %v1274_v34, 0.0 }
 0x8c9   : > { %1276 = vadd.xlane.f32.xlu1 %v1275_v35 }
 0x956   : > { %v1277_v36 = vpop.xlane.xlu1 %1276 }
 0x957   : > { %v1278_v37 = vmul.f32 0.03125, %v1277_v36 }
 0x959   : > { %v1279_v38 = vadd.f32 1e-05, %v1278_v37 }
 0x95b   : > { %1697 = vrsqrt.f32 %v1279_v38 }
 0x965   : > { %v1698_v39 = vpop.eup %1697 }
 0x966   : > { %v1281_v41 = vmul.f32 %v1698_v39, %v1273_v33 }
 0x968   : > { %v1288_v43 = vmul.f32 %v1477_v40, %v1281_v41 }
 0x96a   : > { %v1295_v44 = vadd.f32 %v1478_v42, %v1288_v43 }
 0x96c   : > { %1296 = vst.msk [vmem:[%s602_s22] sm:$0xff] %vm651_vm2, %v1295_v44 }
 0x96d PF: > { %s2215_s24 = sld [smem:[#allocation9_spill]]  ;;  %s2218_s27 = sld [smem:[#allocation25_spill]] }
 0x96e   : > { %s2216_s25 = sld [smem:[#allocation7_spill]]  ;;  %s1311_s21 = sshll.u32 %s602_s22, 4  ;;  %s1312_s21 = int_to_ptr.vmem [resolvable:$true] %s1311_s21 }
 0x96f   : > { %s1699_s9 = scalar_lea.vmem %s1312_s21, 128  ;;  %s1803_s11 = smov [#allocation3]  }
 0x970   : > { %p1700_p2 = scmp.ne.s32.totalorder %s1312_s21, %s1699_s9  ;;  %s1703_s13 = sshll.u32 %s1803_s11, 4  ;;  %s1704_s13 = int_to_ptr.vmem [resolvable:$false] %s1703_s13 }
 0x971   : > { %s1705_s14 = scalar_lea.vmem %s1704_s13, 256  ;;  %p1706_p6 = scmp.lt.s32.totalorder %s1312_s21, %s1704_s13 }
 0x972   : > { %p1701_p4 = pnand %p1700_p2, %p1938_p3  ;;  %p1707_p7 = scmp.lt.s32.totalorder %s1705_s14, %s1699_s9 }
 0x973   : > { %s1480_s18 = sshll.u32 %s2215_s24, 7  ;;  %s2219_s0 = smov %s2218_s27 }
 0x974   : > { %s2104_s29 = scalar_lea.hbm %s2218_s27, %s1480_s18  ;;  %s2220_s28 = sand.u32 1, %s2216_s25  }
 0x975   : > { %s1298_s20 = scalar_lea.sflag [#allocation4], %s2220_s28  ;;  %p1702_p5 = pneg %p1701_p4 }
 0x976   : > { %p1708_p8 = por %p1707_p7, %p1706_p6 }
 0x978   : > { %p1709_p10 = pnand %p1708_p8, %p1702_p5 }
 0x97a   : > { %1712 = shalt.err (!%p1709_p10)
}
 0x97b   : > { %s1713_s26 = scalar_lea.hbm %s2104_s29, 128  ;;  %s1717_s1 = scalar_lea.hbm %s2219_s0, 256 }
 0x97c   : > { %p1714_p11 = scmp.ne.s32.totalorder %s2104_s29, %s1713_s26  ;;  %p1718_p0 = scmp.lt.u32.totalorder %s2104_s29, %s2219_s0 }
 0x97d   : > { %p1719_p1 = scmp.lt.u32.totalorder %s1717_s1, %s1713_s26  ;;  %p1721_p4 = scmp.lt.u32.totalorder %s1713_s26, %s2104_s29 }
 0x97e   : > { %p1715_p12 = pnand %p1714_p11, %p1938_p3 }
 0x97f   : > { %p1720_p2 = por %p1719_p1, %p1718_p0 }
 0x980   : > { %p1716_p13 = pneg %p1715_p12 }
 0x981   : > { %p1722_p5 = por %p1721_p4, %p1720_p2 }
 0x983   : > { %p1723_p6 = pnand %p1722_p5, %p1716_p13 }
 0x985   : > { %1726 = shalt.err (!%p1723_p6)
}
 0x986   : > { %1612 = dma.vmem_to_hbm [thread:$0]  (%p1938_p3), %s1312_s21, 128, %s2104_s29, %s1298_s20  }
 0x987 PF: > { %s2221_s24 = sld [smem:[#allocation12_spill]]  ;;  %s2222_s25 = sld [smem:[#allocation6_spill]] }
 0x98d   : > { %p1618_p7 = scmp.ge.s32.totalorder %s2221_s24, 2  ;;  %s1323_s30 = sand.u32 1, %s2222_s25  }
 0x98e   : > { %s1324_s19 = scalar_lea.sflag [#allocation4], %s1323_s30 }
 0x98f   : > { %p1615_p8 = pnand %p1618_p7, %p1948_p9 }
 0x991   : > { %1760 = dma.done.wait (!%p1615_p8), %s1324_s19, 128  }
 0x992   : > { %1762 = vsyncadd (!%p1615_p8), %s1324_s19, 4294967168  ;;  %s29_s28 = sadd.s32 1, %s2221_s24   ;;  %s2224_s21 = sld [smem:[#allocation7_spill]] }
 0x993   : > { %p26_p10 = scmp.ge.s32.totalorder %s29_s28, 10   ;;  %s2225_s22 = sld [smem:[#allocation8_spill]] }
 0x994   : > { %s2226_s23 = sld [smem:[#allocation17_spill]]  ;;  %s2227_s24 = sld [smem:[#allocation10_spill]] }
 0x995   : > { %s2228_s25 = sld [smem:[#allocation11_spill]]  ;;  %s2229_s26 = sld [smem:[#allocation13_spill]] }
 0x996   : > { %s2230_s27 = sld [smem:[#allocation15_spill]]  ;;  %28 = sbr.rel (!%p26_p10) target bundleno = 14 (0xe), region = 145 }
 0x99d   :  { %1329 = vsyncpa [#allocation4], 1 }
 0x99e   :  { %1331 = vsyncpa [#allocation4 + $0x1], 1 }

</bundles_post_ra>
